<compile_context>
chip_gen: v7x
topology: tpu7x:2x2x1
jax: 0.10.0
libtpu: 0.0.40
codegen_flags: <defaults>
</compile_context>

<pallas_src>
import math
from functools import partial

import jax
import jax.numpy as jnp
from jax.experimental import pallas as pl
from jax.experimental.pallas import tpu as pltpu

_VMEM = pltpu.MemorySpace.VMEM


def _specs(n):
    return [pl.BlockSpec(memory_space=_VMEM) for _ in range(n)]


# ----------------------------------------------------------------------------
# Fused GraphConv + ReLU + TopK score + gating
# ----------------------------------------------------------------------------
def _conv_block_kernel(a_ref, x_ref, wrel_ref, wroot_ref, b_ref, p_ref,
                       xg_ref, s_ref):
    x = x_ref[...]
    # agg_i = sum_{j in N(i)} x_j   (PyG GraphConv, aggr='add')
    agg = jnp.dot(a_ref[...], x, preferred_element_type=jnp.float32)
    h = jnp.dot(agg, wrel_ref[...], preferred_element_type=jnp.float32)
    h = h + jnp.dot(x, wroot_ref[...], preferred_element_type=jnp.float32)
    h = jnp.maximum(h + b_ref[...], 0.0)                      # F.relu fused
    # TopKPooling score: tanh(h @ (p / ||p||)); p pre-normalized at init.
    s = jnp.tanh(jnp.dot(h, p_ref[...], preferred_element_type=jnp.float32))
    xg_ref[...] = h * s                                       # gate by score (mult=1)
    # Lane-dense score output (avoids a 1-lane masked store); wrapper uses col 0.
    s_ref[...] = jnp.broadcast_to(s, s_ref.shape)


def conv_block(a, x, w_rel, w_root, b, p_hat):
    n = x.shape[0]
    c = w_rel.shape[1]
    xg, s = pl.pallas_call(
        _conv_block_kernel,
        out_shape=(jax.ShapeDtypeStruct((n, c), jnp.float32),
                   jax.ShapeDtypeStruct((n, c), jnp.float32)),
        in_specs=_specs(6),
        out_specs=(pl.BlockSpec(memory_space=_VMEM),
                   pl.BlockSpec(memory_space=_VMEM)),
    )(a, x, w_rel, w_root, b, p_hat)
    return xg, s[:, 0]


# ----------------------------------------------------------------------------
# Readout: [gmp | gap] per graph, single lane-dense (G, 2C) store
# ----------------------------------------------------------------------------
def _readout_kernel(maskT_ref, x_ref, o_ref, *, n_per_graph):
    x = x_ref[...]                                            # (N, C)
    mt = maskT_ref[...]                                       # (G, N)
    g_count = mt.shape[0]
    # global_mean_pool: per-graph sum on the MXU, scale by static 1/k
    # (k >= 1 always since k = ceil(0.8 * n) with n >= 1, so no zero-count guard).
    sums = jnp.dot(mt, x, preferred_element_type=jnp.float32)  # (G, C)
    mean = sums * (1.0 / float(n_per_graph))
    # global_max_pool: graphs are contiguous equal-size row blocks after top-k,
    # so use static row slices (no mask columns, no masked stores).
    rows = []
    for g in range(g_count):  # G is tiny; TODO(synk): grid axis / fori for large G
        blk = x_ref[g * n_per_graph:(g + 1) * n_per_graph, :]
        rows.append(jnp.max(blk, axis=0, keepdims=True))       # (1, C)
    gmax = jnp.concatenate(rows, axis=0)                       # (G, C)
    o_ref[...] = jnp.concatenate([gmax, mean], axis=1)         # ONE full-block store


def readout(x, n_per_graph, num_graphs):
    n, c = x.shape
    batch = jnp.repeat(jnp.arange(num_graphs), n_per_graph)
    mask_t = (jnp.arange(num_graphs)[:, None] == batch[None, :]).astype(jnp.float32)
    return pl.pallas_call(
        partial(_readout_kernel, n_per_graph=n_per_graph),
        out_shape=jax.ShapeDtypeStruct((num_graphs, 2 * c), jnp.float32),
        in_specs=_specs(2),
        out_specs=pl.BlockSpec(memory_space=_VMEM),
    )(mask_t, x)


# ----------------------------------------------------------------------------
# Fused MLP head: h = x1+x2+x3 ; lin1+ReLU ; (dropout=id) ; lin2+ReLU ; lin3
# ----------------------------------------------------------------------------
def _head_kernel(x1_ref, x2_ref, x3_ref, w1_ref, b1_ref, w2_ref, b2_ref,
                 w3_ref, b3_ref, logits_ref, feat_ref):
    h = x1_ref[...] + x2_ref[...] + x3_ref[...]
    h = jnp.maximum(
        jnp.dot(h, w1_ref[...], preferred_element_type=jnp.float32) + b1_ref[...],
        0.0)
    feat_ref[...] = h
    # TODO(synk): F.dropout(p=0.5) implemented as eval-mode identity.
    h = jnp.maximum(
        jnp.dot(h, w2_ref[...], preferred_element_type=jnp.float32) + b2_ref[...],
        0.0)
    logits_ref[...] = (jnp.dot(h, w3_ref[...], preferred_element_type=jnp.float32)
                       + b3_ref[...])


def mlp_head(x1, x2, x3, lin1, lin2, lin3_padded, num_classes):
    g = x1.shape[0]
    w1, b1 = lin1
    w2, b2 = lin2
    w3p, b3p = lin3_padded                       # zero-padded to 128 lanes
    logits_p, feats = pl.pallas_call(
        _head_kernel,
        out_shape=(jax.ShapeDtypeStruct((g, w3p.shape[1]), jnp.float32),
                   jax.ShapeDtypeStruct((g, w1.shape[1]), jnp.float32)),
        in_specs=_specs(9),
        out_specs=(pl.BlockSpec(memory_space=_VMEM),
                   pl.BlockSpec(memory_space=_VMEM)),
    )(x1, x2, x3, w1, b1, w2, b2, w3p, b3p)
    return logits_p[:, :num_classes], feats


# ----------------------------------------------------------------------------
# TopK selection glue (data-dependent gather stays in plain JAX, vectorized)
# ----------------------------------------------------------------------------
def topk_select(xg, score, a, n_per_graph, num_graphs, ratio=0.8):
    k = int(math.ceil(ratio * n_per_graph))                   # static per graph
    s2 = score.reshape(num_graphs, n_per_graph)
    _, idx = jax.lax.top_k(s2, k)                             # (G, k) descending
    perm = (idx + (jnp.arange(num_graphs) * n_per_graph)[:, None]).reshape(-1)
    x_new = xg[perm]                                          # already score-gated
    a_new = a[perm][:, perm]                                  # filter_adj equivalent
    return x_new, a_new, k


# ----------------------------------------------------------------------------
# Parameters (deterministic, Linear-style uniform init)
# ----------------------------------------------------------------------------
def init_params(key, num_features, num_classes):
    def lin_init(k, fin, fout, bias=True):
        k1, k2 = jax.random.split(k)
        bound = 1.0 / math.sqrt(fin)
        w = jax.random.uniform(k1, (fin, fout), jnp.float32, -bound, bound)
        b = (jax.random.uniform(k2, (1, fout), jnp.float32, -bound, bound)
             if bias else None)
        return w, b

    keys = jax.random.split(key, 12)
    params = {}
    dims = [(num_features, 128), (128, 128), (128, 128)]
    for i, (fin, fout) in enumerate(dims, start=1):
        w_rel, b_rel = lin_init(keys[3 * i - 3], fin, fout, bias=True)
        w_root, _ = lin_init(keys[3 * i - 2], fin, fout, bias=False)
        p = jax.random.uniform(keys[3 * i - 1], (fout, 1), jnp.float32, -1.0, 1.0)
        p_hat = p / jnp.sqrt(jnp.sum(p * p))      # fold ||p|| into the weight
        params[f"conv{i}"] = (w_rel, w_root, b_rel)
        params[f"pool{i}"] = p_hat
    params["lin1"] = lin_init(keys[9], 256, 128)
    params["lin2"] = lin_init(keys[10], 128, 64)
    w3, b3 = lin_init(keys[11], 64, num_classes)
    pad = 128                                     # lane-dense logits store
    w3p = jnp.zeros((64, pad), jnp.float32).at[:, :num_classes].set(w3)
    b3p = jnp.zeros((1, pad), jnp.float32).at[:, :num_classes].set(b3)
    params["lin3"] = (w3p, b3p)
    return params


# ----------------------------------------------------------------------------
# Net.forward
# ----------------------------------------------------------------------------
def net_forward(params, x, a, n_per_graph, num_graphs, num_classes):
    # block 1
    xg, s = conv_block(a, x, *params["conv1"], params["pool1"])
    x, a, n_per_graph = topk_select(xg, s, a, n_per_graph, num_graphs)
    x1 = readout(x, n_per_graph, num_graphs)
    # block 2
    xg, s = conv_block(a, x, *params["conv2"], params["pool2"])
    x, a, n_per_graph = topk_select(xg, s, a, n_per_graph, num_graphs)
    x2 = readout(x, n_per_graph, num_graphs)
    # block 3
    xg, s = conv_block(a, x, *params["conv3"], params["pool3"])
    x, a, n_per_graph = topk_select(xg, s, a, n_per_graph, num_graphs)
    x3 = readout(x, n_per_graph, num_graphs)

    logits, features = mlp_head(x1, x2, x3, params["lin1"], params["lin2"],
                                params["lin3"], num_classes)
    return logits, features


# ----------------------------------------------------------------------------
if __name__ == "__main__":
    num_features, num_classes = 16, 3
    num_graphs, n_per_graph = 2, 16
    n_total = num_graphs * n_per_graph

    key = jax.random.PRNGKey(0)
    k_feat, k_params = jax.random.split(key, 2)

    x = jax.random.normal(k_feat, (n_total, num_features), jnp.float32)

    # Deterministic edges: per-graph bidirectional ring + one chord per node.
    src, dst = [], []
    for g in range(num_graphs):
        off = g * n_per_graph
        for i in range(n_per_graph):
            j = (i + 1) % n_per_graph
            src += [off + i, off + j]
            dst += [off + j, off + i]
            j2 = (i + 5) % n_per_graph
            src += [off + i]
            dst += [off + j2]
    src = jnp.asarray(src)
    dst = jnp.asarray(dst)
    # A[dst, src]: messages flow source -> target (PyG convention)
    a = jnp.zeros((n_total, n_total), jnp.float32).at[dst, src].add(1.0)

    params = init_params(k_params, num_features, num_classes)

    logits, features = net_forward(params, x, a, n_per_graph, num_graphs,
                                   num_classes)
    jax.block_until_ready((logits, features))

    assert logits.shape == (num_graphs, num_classes)
    assert features.shape == (num_graphs, 128)
    assert bool(jnp.all(jnp.isfinite(logits))) and bool(jnp.all(jnp.isfinite(features)))
    print("KERNEL_OK")
</pallas_src>

<mosaic_0001>
module attributes {stable_mosaic.version = 11 : i64} {
  func.func @_conv_block_kernel(%arg0: memref<32x32xf32, #tpu.memory_space<vmem>>, %arg1: memref<32x16xf32, #tpu.memory_space<vmem>>, %arg2: memref<16x128xf32, #tpu.memory_space<vmem>>, %arg3: memref<16x128xf32, #tpu.memory_space<vmem>>, %arg4: memref<1x128xf32, #tpu.memory_space<vmem>>, %arg5: memref<128x1xf32, #tpu.memory_space<vmem>>, %arg6: memref<32x128xf32, #tpu.memory_space<vmem>>, %arg7: memref<32x128xf32, #tpu.memory_space<vmem>>) attributes {dimension_semantics = [], scalar_prefetch = 0 : i64, scratch_operands = 0 : i64, tpu.core_type = #tpu.core_type<tc>} {
    %c0 = arith.constant 0 : index
    %c0_0 = arith.constant 0 : index
    %0 = vector.load %arg1[%c0, %c0_0] : memref<32x16xf32, #tpu.memory_space<vmem>>, vector<32x16xf32>
    %c0_1 = arith.constant 0 : index
    %c0_2 = arith.constant 0 : index
    %1 = vector.load %arg0[%c0_1, %c0_2] : memref<32x32xf32, #tpu.memory_space<vmem>>, vector<32x32xf32>
    %cst = arith.constant dense<0.000000e+00> : vector<32x16xf32>
    %2 = tpu.matmul %1, %0, %cst {dimension_numbers = #tpu.dot_dimension_numbers<[1], [0], [0], [1], [0, 0, 1, 1], [], []>} : vector<32x32xf32>, vector<32x16xf32>, vector<32x16xf32> -> vector<32x16xf32>
    %c0_3 = arith.constant 0 : index
    %c0_4 = arith.constant 0 : index
    %3 = vector.load %arg2[%c0_3, %c0_4] : memref<16x128xf32, #tpu.memory_space<vmem>>, vector<16x128xf32>
    %cst_5 = arith.constant dense<0.000000e+00> : vector<32x128xf32>
    %4 = tpu.matmul %2, %3, %cst_5 {dimension_numbers = #tpu.dot_dimension_numbers<[1], [0], [0], [1], [0, 0, 1, 1], [], []>} : vector<32x16xf32>, vector<16x128xf32>, vector<32x128xf32> -> vector<32x128xf32>
    %c0_6 = arith.constant 0 : index
    %c0_7 = arith.constant 0 : index
    %5 = vector.load %arg3[%c0_6, %c0_7] : memref<16x128xf32, #tpu.memory_space<vmem>>, vector<16x128xf32>
    %cst_8 = arith.constant dense<0.000000e+00> : vector<32x128xf32>
    %6 = tpu.matmul %0, %5, %cst_8 {dimension_numbers = #tpu.dot_dimension_numbers<[1], [0], [0], [1], [0, 0, 1, 1], [], []>} : vector<32x16xf32>, vector<16x128xf32>, vector<32x128xf32> -> vector<32x128xf32>
    %7 = arith.addf %4, %6 : vector<32x128xf32>
    %c0_9 = arith.constant 0 : index
    %c0_10 = arith.constant 0 : index
    %8 = vector.load %arg4[%c0_9, %c0_10] : memref<1x128xf32, #tpu.memory_space<vmem>>, vector<1x128xf32>
    %9 = vector.broadcast %8 : vector<1x128xf32> to vector<32x128xf32>
    %10 = arith.addf %7, %9 : vector<32x128xf32>
    %cst_11 = arith.constant 0.000000e+00 : f32
    %11 = vector.broadcast %cst_11 : f32 to vector<32x128xf32>
    %12 = arith.maximumf %10, %11 : vector<32x128xf32>
    %c0_12 = arith.constant 0 : index
    %c0_13 = arith.constant 0 : index
    %13 = vector.load %arg5[%c0_12, %c0_13] : memref<128x1xf32, #tpu.memory_space<vmem>>, vector<128x1xf32>
    %cst_14 = arith.constant dense<0.000000e+00> : vector<32x1xf32>
    %14 = tpu.matmul %12, %13, %cst_14 {dimension_numbers = #tpu.dot_dimension_numbers<[1], [0], [0], [1], [0, 0, 1, 1], [], []>} : vector<32x128xf32>, vector<128x1xf32>, vector<32x1xf32> -> vector<32x1xf32>
    %15 = math.tanh %14 : vector<32x1xf32>
    %16 = vector.broadcast %15 : vector<32x1xf32> to vector<32x128xf32>
    %17 = arith.mulf %12, %16 : vector<32x128xf32>
    %c0_15 = arith.constant 0 : index
    %c0_16 = arith.constant 0 : index
    %18 = vector.load %arg6[%c0_15, %c0_16] : memref<32x128xf32, #tpu.memory_space<vmem>>, vector<32x128xf32>
    tpu.vector_store %arg6[%c0_15, %c0_16], %17 {strides = array<i32>} : memref<32x128xf32, #tpu.memory_space<vmem>>, vector<32x128xf32>,
    %19 = vector.shape_cast %15 : vector<32x1xf32> to vector<32x1xf32>
    %20 = vector.broadcast %19 : vector<32x1xf32> to vector<32x128xf32>
    %c0_17 = arith.constant 0 : index
    %c0_18 = arith.constant 0 : index
    %21 = vector.load %arg7[%c0_17, %c0_18] : memref<32x128xf32, #tpu.memory_space<vmem>>, vector<32x128xf32>
    tpu.vector_store %arg7[%c0_17, %c0_18], %20 {strides = array<i32>} : memref<32x128xf32, #tpu.memory_space<vmem>>, vector<32x128xf32>,
    return
  }
}

</mosaic_0001>

<bundles_post_ra>
// kernel: tpu_custom_call.1
= control target key start
LH: loop header
LB: loop body
LE: loop exit
PB: predicated region body
PF: predicated region fallthrough
CT: control target
= control target key end

     0   :  { %13 = vsyncpa [#allocation3], 0  ;;  %vm35_vm0 = vcmask 261120   ;;  %s931_s0 = inlined_call_operand.vmem [shape: f32[32,32], index: 0, kind: input, shape index: {}]   ;;  %s932_s1 = inlined_call_operand.vmem [shape: f32[32,16], index: 1, kind: input, shape index: {}]   ;;  %s933_s2 = inlined_call_operand.vmem [shape: f32[16,128], index: 2, kind: input, shape index: {}]   ;;  %s934_s3 = inlined_call_operand.vmem [shape: f32[16,128], index: 3, kind: input, shape index: {}]   ;;  %s935_s4 = inlined_call_operand.vmem [shape: f32[1,128], index: 4, kind: input, shape index: {}]   ;;  %s936_s5 = inlined_call_operand.vmem [shape: f32[128,1], index: 5, kind: input, shape index: {}]   ;;  %s937_s6 = inlined_call_operand.hbm [shape: f32[32,128], index: 6, kind: output, shape index: {0}]   ;;  %s938_s7 = inlined_call_operand.hbm [shape: f32[32,128], index: 7, kind: output, shape index: {1}]  }
   0x1   :  { %v27_v0 = vld [vmem:[%s932_s1] sm:$0xff]  ;;  %v28_v1 = vld [vmem:[%s932_s1 + $0x8] sm:$0xff]  ;;  %v29_v2 = vld [vmem:[%s932_s1 + $0x10] sm:$0xff] }
   0x2   :  { %v641_v3 = vpack.c.bf16 %v28_v1, %v27_v0  ;;  %v30_v4 = vld [vmem:[%s932_s1 + $0x18] sm:$0xff]  ;;  %v31_v5 = vld [vmem:[%s931_s0] sm:$0xff]  ;;  %v136_v8 = vld [vmem:[%s934_s3 + $0x8] sm:$0xff] }
   0x3   :  { %v645_v6 = vpack.c.bf16 %v30_v4, %v29_v2  ;;  %577 = vmatprep.mubr.msk.f32.mxu1 %vm35_vm0, %v31_v5  ;;  %v135_v7 = vld [vmem:[%s934_s3] sm:$0xff] }
   0x4   :  { %642 = vmatprep.subr.bf16.mxu1 %v641_v3 }
   0x5   :  { %644 = vmatpush3.bf16.msra.mxu1 %v641_v3 }
   0x6   :  { %14 = vsyncpa [#allocation5], 0  ;;  %646 = vmatprep.subr.bf16.mxu1 %v645_v6  ;;  %v649_v9 = vpack.c.bf16 %v136_v8, %v135_v7  ;;  %v133_v10 = vld [vmem:[%s933_s2] sm:$0xff]  ;;  %v134_v11 = vld [vmem:[%s933_s2 + $0x8] sm:$0xff]  ;;  %vm137_vm1 = vcmask 130048   ;;  %v756_v57 = vmov 0  }
   0x7   :  { %v32_v12 = vld [vmem:[%s931_s0 + $0x8] sm:$0xff]  ;;  %v33_v13 = vld [vmem:[%s931_s0 + $0x10] sm:$0xff]  ;;  %v653_v14 = vpack.c.bf16 %v134_v11, %v133_v10  ;;  %v34_v15 = vld [vmem:[%s931_s0 + $0x18] sm:$0xff]  ;;  %698 = vset.pattern.permute.xlu0 %v756_v57  ;;  %699 = vset.pattern.permute.xlu1 %v756_v57  ;;  %s758_s28 = smov [#allocation2]  }
   0x8   :  { %v347_v16 = vld [vmem:[%s936_s5] sm:$0xff]  ;;  %v348_v17 = vld [vmem:[%s936_s5 + $0x8] sm:$0xff]  ;;  %v349_v18 = vld [vmem:[%s936_s5 + $0x10] sm:$0xff]  ;;  %s489_s29 = sshll.u32 %s758_s28, 4  ;;  %s900_s29 = int_to_ptr.vmem [resolvable:$true] %s489_s29 }
   0x9   :  { %648 = vmatpush3.bf16.msra.mxu1 %v645_v6  ;;  %v657_v19 = vpack.c.bf16 %v348_v17, %v347_v16  ;;  %v350_v20 = vld [vmem:[%s936_s5 + $0x18] sm:$0xff]  ;;  %v351_v22 = vld [vmem:[%s936_s5 + $0x20] sm:$0xff]  ;;  %v352_v23 = vld [vmem:[%s936_s5 + $0x28] sm:$0xff] }
   0xa   :  { %650 = vmatprep.subr.bf16.mxu1 %v649_v9  ;;  %v661_v21 = vpack.c.bf16 %v350_v20, %v349_v18  ;;  %v665_v24 = vpack.c.bf16 %v352_v23, %v351_v22  ;;  %v353_v25 = vld [vmem:[%s936_s5 + $0x30] sm:$0xff]  ;;  %v354_v26 = vld [vmem:[%s936_s5 + $0x38] sm:$0xff]  ;;  %v355_v28 = vld [vmem:[%s936_s5 + $0x40] sm:$0xff] }
   0xb   :  { %658 = vmatprep.subr.bf16.mxu0 %v657_v19  ;;  %v669_v27 = vpack.c.bf16 %v354_v26, %v353_v25  ;;  %v356_v29 = vld [vmem:[%s936_s5 + $0x48] sm:$0xff]  ;;  %v357_v31 = vld [vmem:[%s936_s5 + $0x50] sm:$0xff]  ;;  %v358_v32 = vld [vmem:[%s936_s5 + $0x58] sm:$0xff] }
   0xc   :  { %578 = vmatmul.mubr.msk.f32.vlgmr.msra.gmra.mrb[0].mxu1 %vm35_vm0, %v32_v12  ;;  %660 = vmatpush3.bf16.msra.mxu0 %v657_v19  ;;  %v673_v30 = vpack.c.bf16 %v356_v29, %v355_v28  ;;  %v677_v33 = vpack.c.bf16 %v358_v32, %v357_v31  ;;  %v359_v34 = vld [vmem:[%s936_s5 + $0x60] sm:$0xff]  ;;  %v360_v35 = vld [vmem:[%s936_s5 + $0x68] sm:$0xff]  ;;  %v361_v41 = vld [vmem:[%s936_s5 + $0x70] sm:$0xff] }
   0xd   :  { %580 = vmatprep.mubr.msk.f32.mxu1 %vm35_vm0, %v33_v13  ;;  %652 = vmatpush3.bf16.msra.mxu1 %v649_v9  ;;  %v681_v36 = vpack.c.bf16 %v360_v35, %v359_v34  ;;  %v362_v42 = vld [vmem:[%s936_s5 + $0x78] sm:$0xff]  ;;  %v528_v44 = vld [vmem:[%s935_s4] ss:$0 sm:$0xff]  ;;  %s757_s4 = smov [#allocation4]  }
   0xe   :  { %654 = vmatprep.subr.bf16.mxu1 %v653_v14  ;;  %662 = vmatprep.subr.bf16.mxu0 %v661_v21  ;;  %v685_v43 = vpack.c.bf16 %v362_v42, %v361_v41  ;;  %s501_s5 = sshll.u32 %s757_s4, 4  ;;  %s502_s5 = int_to_ptr.vmem [resolvable:$true] %s501_s5 }
   0xf   :  { %s708_s30 = scalar_lea.vmem %s502_s5, 512  ;;  %p713_p1 = scmp.lt.s32.totalorder %s502_s5, %s502_s5 }
  0x10   :  { %581 = vmatmul.mubr.msk.f32.gmra.mrb[2].mxu1 %vm35_vm0, %v34_v15  ;;  %664 = vmatpush3.bf16.msra.mxu0 %v661_v21  ;;  %p709_p0 = scmp.ne.s32.totalorder %s502_s5, %s708_s30  ;;  %p714_p2 = scmp.lt.s32.totalorder %s708_s30, %s708_s30 }
  0x11   :  { %587 = vmatprep.mubr.msk.f32.mxu1 %vm137_vm1, %v27_v0  ;;  %666 = vmatprep.subr.bf16.mxu0 %v665_v24 }
  0x12   :  { %p715_p3 = por %p714_p2, %p713_p1 }
  0x14   :  { %588 = vmatmul.mubr.msk.f32.vlgmr.msra.gmra.mrb[4].mxu1 %vm137_vm1, %v28_v1  ;;  %668 = vmatpush3.bf16.msra.mxu0 %v665_v24  ;;  %p716_p4 = pnand %p715_p3, %p709_p0 }
  0x15   :  { %656 = vmatpush3.bf16.msra.mxu1 %v653_v14  ;;  %590 = vmatprep.mubr.msk.f32.mxu1 %vm137_vm1, %v29_v2 }
  0x16   :  { %670 = vmatprep.subr.bf16.mxu0 %v669_v27 }
  0x18   :  { %591 = vmatmul.mubr.msk.f32.gmra.mrb[6].mxu1 %vm137_vm1, %v30_v4  ;;  %672 = vmatpush3.bf16.msra.mxu0 %v669_v27 }
  0x19   :  { %674 = vmatprep.subr.bf16.mxu0 %v673_v30 }
  0x1c   :  { %676 = vmatpush3.bf16.msra.mxu0 %v673_v30 }
  0x1d   :  { %678 = vmatprep.subr.bf16.mxu0 %v677_v33 }
  0x20   :  { %680 = vmatpush3.bf16.msra.mxu0 %v677_v33 }
  0x21   :  { %682 = vmatprep.subr.bf16.mxu0 %v681_v36 }
  0x24   :  { %684 = vmatpush3.bf16.msra.mxu0 %v681_v36 }
  0x25   :  { %686 = vmatprep.subr.bf16.mxu0 %v685_v43 }
  0x28   :  { %688 = vmatpush3.bf16.msra.mxu0 %v685_v43 }
  0xdf   :  { %v579_v37 = vpop.f32.mrb[0].mxu1 }
  0xe0   :  { %v114_v38 = vpop.f32.mrb[1].mxu1 }
  0xe1   :  { %597 = vmatprep.mubr.msk.f32.mxu1 %vm137_vm1, %v114_v38 }
  0xe2   :  { %598 = vmatmul.mubr.msk.f32.vlgmr.msra.gmra.mrb[4].mxu1 %vm137_vm1, %v579_v37 }
  0xe3   :  { %v582_v39 = vpop.f32.mrb[2].mxu1 }
  0xe4   :  { %v124_v40 = vpop.f32.mrb[3].mxu1 }
  0xe5   :  { %600 = vmatprep.mubr.msk.f32.mxu1 %vm137_vm1, %v124_v40 }
  0xe6   :  { %601 = vmatmul.mubr.msk.f32.gmra.mrb[6].mxu1 %vm137_vm1, %v582_v39 }
 0x1b5   :  { %v599_v45 = vpop.f32.mrb[4].mxu1 }
 0x1b6   :  { %v340_v46 = vadd.f32 %v599_v45, %v528_v44  ;;  %v313_v47 = vpop.f32.mrb[5].mxu1 }
 0x1b7   :  { %v339_v48 = vadd.f32 %v528_v44, %v313_v47 }
 0x1b8   :  { %v344_v51 = vmax.f32 %v340_v46, 0.0 }
 0x1b9   :  { %v343_v49 = vmax.f32 %v339_v48, 0.0  ;;  %v602_v50 = vpop.f32.mrb[6].mxu1 }
 0x1ba   :  { %v342_v52 = vadd.f32 %v602_v50, %v528_v44  ;;  %v323_v53 = vpop.f32.mrb[7].mxu1 }
 0x1bb   :  { %v341_v54 = vadd.f32 %v528_v44, %v323_v53  ;;  %635 = vmatprep.mubr.f32.mxu0 %v343_v49 }
 0x1bc   :  { %636 = vmatmul.mubr.f32.vlgmr.msra.gmra.mrb[0].mxu0 %v344_v51  ;;  %v346_v56 = vmax.f32 %v342_v52, 0.0 }
 0x1bd   :  { %v345_v55 = vmax.f32 %v341_v54, 0.0 }
 0x1bf   :  { %638 = vmatprep.mubr.f32.mxu0 %v345_v55 }
 0x1c0   :  { %639 = vmatmul.mubr.f32.gmra.mrb[2].mxu0 %v346_v56 }
 0x28f   :  { %v637_v58 = vpop.f32.mrb[0].mxu0 }
 0x290   :  { %v429_v59 = vpop.f32.mrb[1].mxu0 }
 0x291   :  { %700 = vtanh.f32 %v429_v59 }
 0x292   :  { %702 = vtanh.f32 %v637_v58 }
 0x293   :  { %v640_v60 = vpop.f32.mrb[2].mxu0 }
 0x294   :  { %v439_v61 = vpop.f32.mrb[3].mxu0 }
 0x295   :  { %704 = vtanh.f32 %v439_v61 }
 0x296   :  { %706 = vtanh.f32 %v640_v60 }
 0x29b   :  { %v701_v62 = vpop.eup %700 }
 0x29c   :  { %454 = vperm.xlu0 %698, %v701_v62   ;;  %v703_v63 = vpop.eup %702 }
 0x29f   :  { %v705_v0 = vpop.eup %704 }
 0x2a0   :  { %459 = vperm.xlu0 %698, %v703_v63   ;;  %464 = vperm.xlu1 %699, %v705_v0   ;;  %v707_v1 = vpop.eup %706 }
 0x2a4   :  { %469 = vperm.xlu1 %699, %v707_v1  }
 0x31b   :  { %v455_v2 = vpop.permute.xlu0 %454 }
 0x31c   :  { %v472_v3 = vmul.f32 %v455_v2, %v343_v49  ;;  %480 = vst [vmem:[#allocation4] sm:$0xff] %v455_v2 }
 0x31e   :  { %476 = vst [vmem:[#allocation2] sm:$0xff] %v472_v3 }
 0x31f   :  { %v460_v4 = vpop.permute.xlu0 %459  ;;  %v465_v5 = vpop.permute.xlu1 %464 }
 0x320   :  { %v473_v6 = vmul.f32 %v460_v4, %v344_v51  ;;  %481 = vst [vmem:[#allocation4 + $0x8] sm:$0xff] %v460_v4  ;;  %v474_v7 = vmul.f32 %v465_v5, %v345_v55  ;;  %482 = vst [vmem:[#allocation4 + $0x10] sm:$0xff] %v465_v5 }
 0x322   :  { %477 = vst [vmem:[#allocation2 + $0x8] sm:$0xff] %v473_v6  ;;  %478 = vst [vmem:[#allocation2 + $0x10] sm:$0xff] %v474_v7 }
 0x323   :  { %v470_v8 = vpop.permute.xlu1 %469 }
 0x324   :  { %v475_v9 = vmul.f32 %v470_v8, %v346_v56  ;;  %483 = vst [vmem:[#allocation4 + $0x18] sm:$0xff] %v470_v8 }
 0x325   :  { %719 = shalt.err (!%p716_p4)
}
 0x326   :  { %s720_s10 = scalar_lea.hbm %s938_s7, 512 }
 0x327   :  { %p721_p5 = scmp.ne.s32.totalorder %s938_s7, %s720_s10  ;;  %p724_p6 = scmp.lt.u32.totalorder %s720_s10, %s938_s7 }
 0x329   :  { %p726_p7 = pnand %p724_p6, %p721_p5 }
 0x32b   :  { %729 = shalt.err (!%p726_p7)
}
 0x32c   :  { %s759_s1 = smov 128   ;;  %s760_s15 = smov 8   ;;  %479 = vst [vmem:[#allocation2 + $0x18] sm:$0xff] %v475_v9 }
 0x32d   :  { %507 = dma.vmem_to_hbm [thread:$0]  %s502_s5, 512, %s938_s7, [#allocation5], %s759_s1, %s759_s1, %s760_s15  }
 0x32e   :  { %s730_s18 = scalar_lea.vmem %s900_s29, 512  ;;  %p735_p9 = scmp.lt.s32.totalorder %s900_s29, %s900_s29 }
 0x32f   :  { %p731_p8 = scmp.ne.s32.totalorder %s900_s29, %s730_s18  ;;  %p736_p10 = scmp.lt.s32.totalorder %s730_s18, %s730_s18 }
 0x331   :  { %p737_p11 = por %p736_p10, %p735_p9 }
 0x333   :  { %p738_p12 = pnand %p737_p11, %p731_p8 }
 0x335   :  { %741 = shalt.err (!%p738_p12)
}
 0x336   :  { %s742_s21 = scalar_lea.hbm %s937_s6, 512 }
 0x337   :  { %p743_p13 = scmp.ne.s32.totalorder %s937_s6, %s742_s21  ;;  %p746_p0 = scmp.lt.u32.totalorder %s742_s21, %s937_s6 }
 0x339   :  { %p748_p1 = pnand %p746_p0, %p743_p13 }
 0x33b   :  { %751 = shalt.err (!%p748_p1)
}
 0x33c   :  { %495 = dma.vmem_to_hbm [thread:$0]  %s900_s29, 512, %s937_s6, [#allocation3], %s759_s1, %s759_s1, %s760_s15  }
 0x33d   :  { %752 = dma.done.wait [#allocation3], 512  }
 0x33e   :  { %753 = vsyncadd [#allocation3], 4294966784 }
 0x33f   :  { %754 = dma.done.wait [#allocation5], 512  }
 0x340   :  { %755 = vsyncadd [#allocation5], 4294966784 }
 0x341   :  { %514 = vsyncpa [#allocation3], 1 }
 0x342   :  { %515 = vsyncpa [#allocation5], 1 }

</bundles_post_ra>
